<compile_context>
chip_gen: v7x
topology: tpu7x:2x2x1
jax: 0.10.0
libtpu: 0.0.40
codegen_flags: <defaults>
</compile_context>

<pallas_src>
import numpy as np
import jax
import jax.numpy as jnp
from jax.experimental import pallas as pl
from jax.experimental.pallas import tpu as pltpu

# ---------------- hyper-parameters (MPNN defaults) ----------------
NWAVE = 8
MAX_L = 2
RMAXL = MAX_L + 1
NANG = RMAXL * RMAXL            # 9
FEAT = NANG * NWAVE             # 72  (flattened angular x wave lane axis)
CUTOFF = 4.0
NCONTRACT = 64
EMB_NL = [1, 8, 8]
ITER_NL = [64, 64, 64]
OUT_NL = [64, 64, 64]
ITER_LOOP = 3
INITPOT = 0.0
LN_EPS = 1e-5

ROW_TILE = 1024                 # row tile for element-wise / MLP kernels
DENS_TILE = 512                 # row tile for the density (matmul) kernel
VMEM_LIMIT = 32 * 1024 * 1024   # explicit scoped-VMEM limit (safe on v5e/v6e/v7x)


def _row_params(n, max_tile):
    """Row tile + grid.  tile == n (full dim, always legal) when small, else /8 tile."""
    tile = n if n <= max_tile else max_tile
    return tile, pl.cdiv(n, tile)


def _cparams(n_axes=1):
    return pltpu.CompilerParams(
        dimension_semantics=("parallel",) * n_axes,
        vmem_limit_bytes=VMEM_LIMIT)


# ---------------- Pallas kernels ----------------
def _make_mlp_kernel(n_hidden):
    # Fused NNMod: (Linear -> LayerNorm -> SiLU) x n_hidden -> Linear, weights resident.
    # TODO(synk): exact Relu_like / NNMod residual structure unavailable; using Linear->LN->SiLU.
    def kernel(*refs):
        x_ref, o_ref = refs[0], refs[-1]
        prm = refs[1:-1]
        x = x_ref[...]
        for h in range(n_hidden):
            w, b, g, bt = (r[...] for r in prm[4 * h:4 * h + 4])
            y = jnp.dot(x, w, preferred_element_type=jnp.float32) + b
            mu = jnp.mean(y, axis=-1, keepdims=True)
            var = jnp.mean(jnp.square(y - mu), axis=-1, keepdims=True)
            y = (y - mu) * jax.lax.rsqrt(var + LN_EPS) * g + bt
            x = y * jax.nn.sigmoid(y)
        wo = prm[4 * n_hidden][...]
        bo = prm[4 * n_hidden + 1][...]
        o_ref[...] = jnp.dot(x, wo, preferred_element_type=jnp.float32) + bo
    return kernel


def _orbital_kernel(dist_ref, emb_ref, sph_ref, esph_ref, ewave_ref, orb_ref):
    # fused cutoff_cosine + radial_func + einsum('i,ij,ij,ki->ikj'), flattened to 72 lanes
    d = dist_ref[...]                                    # (tile, 1)
    cut = 0.5 * jnp.cos(d * (np.pi / CUTOFF)) + 0.5
    cut = cut * cut
    emb = emb_ref[...]                                   # (tile, 24)
    coef = emb[:, :NWAVE]
    alpha = emb[:, NWAVE:2 * NWAVE]
    rs = emb[:, 2 * NWAVE:]
    rw = cut * jnp.exp(-jnp.square(alpha * (d - rs))) * coef          # (tile, 8)
    # lane-broadcast via tiny resident matmuls (no in-kernel reshapes / lane shuffles)
    sph_rep = jnp.dot(sph_ref[...], esph_ref[...], preferred_element_type=jnp.float32)
    rw_rep = jnp.dot(rw, ewave_ref[...], preferred_element_type=jnp.float32)
    orb_ref[...] = sph_rep * rw_rep                      # (tile, 72)


def _weight_orbital_kernel(dist_ref, cf_ref, orb_ref, con_ref, ewave_ref, o_ref):
    # einsum('ij,ikj->ikj') + einsum('ikj,i->ikj'), flattened; cut2 recomputed in-kernel
    d = dist_ref[...]                                    # (tile, 1)
    cut = 0.5 * jnp.cos(d * (np.pi / CUTOFF)) + 0.5
    cut = cut * cut
    cf_rep = jnp.dot(cf_ref[...], ewave_ref[...], preferred_element_type=jnp.float32)
    o_ref[...] = cf_rep * orb_ref[...] + con_ref[...] * cut


def _density_kernel(co_ref, cbd_ref, sum_ref, dens_ref):
    # contracted = center_orbital @ block_diag(coeff)   (rows,72)@(72,576)   (MXU)
    # density    = (contracted**2) @ angular_sum        (rows,576)@(576,64)  (MXU)
    c = jnp.dot(co_ref[...], cbd_ref[...], preferred_element_type=jnp.float32)
    dens_ref[...] = jnp.dot(c * c, sum_ref[...], preferred_element_type=jnp.float32)


# ---------------- Pallas wrappers ----------------
def mlp_pallas(p, x):
    hidden = p["hidden"]
    wo, bo = p["out"]
    n, nin = x.shape
    nout = wo.shape[1]
    tile, grid = _row_params(n, ROW_TILE)
    args = [x]
    in_specs = [pl.BlockSpec((tile, nin), lambda i: (i, 0))]
    for (w, b, g, bt) in hidden:
        for a in (w, b.reshape(1, -1), g.reshape(1, -1), bt.reshape(1, -1)):
            args.append(a)
            in_specs.append(pl.BlockSpec(a.shape, lambda i: (0, 0)))
    bo2 = jnp.asarray(bo, jnp.float32).reshape(1, nout)
    args += [wo, bo2]
    in_specs += [pl.BlockSpec(wo.shape, lambda i: (0, 0)),
                 pl.BlockSpec((1, nout), lambda i: (0, 0))]
    return pl.pallas_call(
        _make_mlp_kernel(len(hidden)),
        out_shape=jax.ShapeDtypeStruct((n, nout), jnp.float32),
        grid=(grid,),
        in_specs=in_specs,
        out_specs=pl.BlockSpec((tile, nout), lambda i: (i, 0)),
        compiler_params=_cparams(),
    )(*args)


def orbital_pallas(distances, neigh_emb, sph_t, esph, ewave):
    nneigh = neigh_emb.shape[0]
    tile, grid = _row_params(nneigh, ROW_TILE)
    return pl.pallas_call(
        _orbital_kernel,
        out_shape=jax.ShapeDtypeStruct((nneigh, FEAT), jnp.float32),
        grid=(grid,),
        in_specs=[pl.BlockSpec((tile, 1), lambda i: (i, 0)),
                  pl.BlockSpec((tile, 3 * NWAVE), lambda i: (i, 0)),
                  pl.BlockSpec((tile, NANG), lambda i: (i, 0)),
                  pl.BlockSpec((NANG, FEAT), lambda i: (0, 0)),
                  pl.BlockSpec((NWAVE, FEAT), lambda i: (0, 0))],
        out_specs=pl.BlockSpec((tile, FEAT), lambda i: (i, 0)),
        compiler_params=_cparams(),
    )(distances.reshape(nneigh, 1), neigh_emb, sph_t, esph, ewave)


def weight_orbital_pallas(distances, cf_n, orbital, con_n, ewave):
    nneigh = orbital.shape[0]
    tile, grid = _row_params(nneigh, ROW_TILE)
    return pl.pallas_call(
        _weight_orbital_kernel,
        out_shape=jax.ShapeDtypeStruct((nneigh, FEAT), jnp.float32),
        grid=(grid,),
        in_specs=[pl.BlockSpec((tile, 1), lambda i: (i, 0)),
                  pl.BlockSpec((tile, NWAVE), lambda i: (i, 0)),
                  pl.BlockSpec((tile, FEAT), lambda i: (i, 0)),
                  pl.BlockSpec((tile, FEAT), lambda i: (i, 0)),
                  pl.BlockSpec((NWAVE, FEAT), lambda i: (0, 0))],
        out_specs=pl.BlockSpec((tile, FEAT), lambda i: (i, 0)),
        compiler_params=_cparams(),
    )(distances.reshape(nneigh, 1), cf_n, orbital, con_n, ewave)


def density_pallas(center_orbital, coeff_bd, sum_mat):
    natom = center_orbital.shape[0]
    tile, grid = _row_params(natom, DENS_TILE)
    return pl.pallas_call(
        _density_kernel,
        out_shape=jax.ShapeDtypeStruct((natom, NCONTRACT), jnp.float32),
        grid=(grid,),
        in_specs=[pl.BlockSpec((tile, FEAT), lambda i: (i, 0)),
                  pl.BlockSpec((FEAT, NANG * NCONTRACT), lambda i: (0, 0)),
                  pl.BlockSpec((NANG * NCONTRACT, NCONTRACT), lambda i: (0, 0))],
        out_specs=pl.BlockSpec((tile, NCONTRACT), lambda i: (i, 0)),
        compiler_params=_cparams(),
    )(center_orbital, coeff_bd, sum_mat)


# ---------------- model math (JAX glue + kernel dispatch) ----------------
def sph_harmonics(vec):
    # TODO(synk): exact sph_cal.SPH_CAL recursion/normalization unavailable;
    # using standard real solid harmonics (r^l * Y_lm) of the raw distance vectors.
    x, y, z = vec[:, 0], vec[:, 1], vec[:, 2]
    r2 = x * x + y * y + z * z
    c0 = 0.5 * np.sqrt(1.0 / np.pi)
    c1 = np.sqrt(3.0 / (4.0 * np.pi))
    c2a = 0.5 * np.sqrt(15.0 / np.pi)
    c2b = 0.25 * np.sqrt(5.0 / np.pi)
    c2c = 0.25 * np.sqrt(15.0 / np.pi)
    return jnp.stack([
        jnp.full_like(x, c0),
        c1 * y, c1 * z, c1 * x,
        c2a * x * y, c2a * y * z, c2b * (3.0 * z * z - r2),
        c2a * x * z, c2c * (x * x - y * y),
    ], axis=0)                                           # (NANG, nneigh)


def build_expand_mats():
    esph = np.zeros((NANG, FEAT), np.float32)
    ewave = np.zeros((NWAVE, FEAT), np.float32)
    for k in range(NANG):
        for j in range(NWAVE):
            esph[k, k * NWAVE + j] = 1.0
            ewave[j, k * NWAVE + j] = 1.0
    return jnp.asarray(esph), jnp.asarray(ewave)


def build_coeff_bd(coeff_full):
    # block-diagonal (72, 576): bd[k*8+j, l*64+m] = coeff_full[k, j, m] * delta_{k,l}
    eye = jnp.eye(NANG, dtype=jnp.float32)
    bd = coeff_full[:, :, None, :] * eye[:, None, :, None]          # (9,8,9,64)
    return bd.reshape(FEAT, NANG * NCONTRACT)


def mlp_apply(p, x, use_pallas):
    if use_pallas:
        return mlp_pallas(p, x)
    for (w, b, g, bt) in p["hidden"]:
        y = x @ w + b
        mu = jnp.mean(y, axis=-1, keepdims=True)
        var = jnp.mean(jnp.square(y - mu), axis=-1, keepdims=True)
        y = (y - mu) * jax.lax.rsqrt(var + LN_EPS) * g + bt
        x = y * jax.nn.sigmoid(y)
    wo, bo = p["out"]
    return x @ wo + bo


def density_compute(center_orbital, coeff_full, coeff_bd, sum_mat, use_pallas):
    if use_pallas:
        return density_pallas(center_orbital, coeff_bd, sum_mat)
    co3 = center_orbital.reshape(-1, NANG, NWAVE)
    contracted = jnp.einsum('ikj,kjm->ikm', co3, coeff_full)
    return jnp.sum(contracted * contracted, axis=1)


def mpnn_forward(params, cart, centerlist, neighlist, local_species,
                 neigh_species, center_neighlist, nlocal, use_pallas=True):
    distvec = cart[centerlist] - cart[neighlist]               # (nneigh, 3)
    distances = jnp.sqrt(jnp.sum(distvec * distvec, axis=1))   # (nneigh,)

    local_coeff = mlp_apply(params["embnn"], params["atom_species"], use_pallas)
    neigh_emb = local_coeff[local_species] * local_coeff[neigh_species]   # (nneigh, 24)

    sph_t = sph_harmonics(distvec).T                           # (nneigh, NANG)
    esph, ewave = params["expand_sph"], params["expand_wave"]

    if use_pallas:
        orbital = orbital_pallas(distances, neigh_emb, sph_t, esph, ewave)
        cut2 = None
    else:
        d2 = distances[:, None]
        cut2 = jnp.square(0.5 * jnp.cos(d2 * (np.pi / CUTOFF)) + 0.5)
        radial = jnp.exp(-jnp.square(neigh_emb[:, NWAVE:2 * NWAVE]
                                     * (d2 - neigh_emb[:, 2 * NWAVE:])))
        rw = cut2 * radial * neigh_emb[:, :NWAVE]
        orbital = (sph_t[:, :, None] * rw[:, None, :]).reshape(-1, FEAT)

    coeff_full = params["contracted_coeff"][params["index_l"]]   # (9, 8, 64)
    coeff_bd = build_coeff_bd(coeff_full)                        # (72, 576)
    sum_mat = params["angular_sum"]                              # (576, 64)

    # TODO(synk): data-dependent scatter (torch.index_add) kept in plain JAX.
    center_orbital = jnp.zeros((nlocal, FEAT), cart.dtype)
    center_orbital = center_orbital.at[centerlist].add(orbital)

    density = density_compute(center_orbital, coeff_full, coeff_bd, sum_mat, use_pallas)

    for it in range(ITER_LOOP):
        iter_coeff = mlp_apply(params["iter"][it], density, use_pallas)   # (natom, 8)
        # TODO(synk): cf_n / con_n gathers and the index_add scatter stay in plain JAX;
        # a fused scalar-prefetch gather + segment-sum kernel would remove this HBM round-trip.
        cf_n = iter_coeff[center_neighlist]                               # (nneigh, 8)
        con_n = center_orbital[center_neighlist]                          # (nneigh, 72)
        if use_pallas:
            weight_orbital = weight_orbital_pallas(distances, cf_n, orbital, con_n, ewave)
        else:
            weight_orbital = (cf_n[:, None, :] * orbital.reshape(-1, NANG, NWAVE)
                              + con_n.reshape(-1, NANG, NWAVE) * cut2[:, :, None]
                              ).reshape(-1, FEAT)
        center_orbital = center_orbital.at[centerlist].add(weight_orbital)
        density = density + density_compute(center_orbital, coeff_full, coeff_bd,
                                            sum_mat, use_pallas)

    output = mlp_apply(params["outnn"], density, use_pallas)    # (natom, 1)
    energy = jnp.sum(output)
    return energy, output


# ---------------- deterministic parameter init ----------------
def xavier_uniform(key, shape, fan_in, fan_out):
    lim = np.sqrt(6.0 / (fan_in + fan_out))
    return jax.random.uniform(key, shape, jnp.float32, -lim, lim)


def init_mlp(key, nl, nout, initbias):
    keys = jax.random.split(key, len(nl) + 1)
    hidden = []
    for i in range(1, len(nl)):
        w = xavier_uniform(keys[i], (nl[i - 1], nl[i]), nl[i - 1], nl[i])
        hidden.append((w,
                       jnp.zeros((nl[i],), jnp.float32),
                       jnp.ones((nl[i],), jnp.float32),
                       jnp.zeros((nl[i],), jnp.float32)))
    wo = xavier_uniform(keys[-1], (nl[-1], nout), nl[-1], nout)
    bo = jnp.asarray(initbias, jnp.float32)
    return {"hidden": hidden, "out": (wo, bo)}


def init_params(key):
    keys = jax.random.split(key, 6)
    contracted_coeff = xavier_uniform(keys[0], (RMAXL, NWAVE, NCONTRACT), NWAVE, NCONTRACT)
    index_l = np.zeros(NANG, dtype=np.int32)
    for l in range(RMAXL):
        index_l[l * l:(l + 1) * (l + 1)] = l
    emb_initbias = jnp.concatenate([
        jax.random.normal(keys[1], (NWAVE,), jnp.float32),
        jnp.ones((NWAVE,), jnp.float32),
        jax.random.uniform(keys[2], (NWAVE,), jnp.float32) * np.sqrt(CUTOFF),
    ])
    esph, ewave = build_expand_mats()
    return {
        "atom_species": jnp.array([[1.0]], jnp.float32),
        "contracted_coeff": contracted_coeff,
        "index_l": jnp.asarray(index_l),
        "expand_sph": esph,
        "expand_wave": ewave,
        "angular_sum": jnp.tile(jnp.eye(NCONTRACT, dtype=jnp.float32), (NANG, 1)),
        "embnn": init_mlp(keys[3], EMB_NL, NWAVE * 3, emb_initbias),
        "iter": [init_mlp(k, ITER_NL, NWAVE, jnp.ones((NWAVE,), jnp.float32))
                 for k in jax.random.split(keys[4], ITER_LOOP)],
        "outnn": init_mlp(keys[5], OUT_NL, 1, jnp.array([INITPOT], jnp.float32)),
    }


# ---------------- main ----------------
if __name__ == "__main__":
    key = jax.random.PRNGKey(0)
    k_param, k_cart = jax.random.split(key)
    params = init_params(k_param)

    natom = 8
    nneigh_per = 4
    cart = jax.random.normal(k_cart, (natom, 3), jnp.float32)

    centerlist = jnp.repeat(jnp.arange(natom, dtype=jnp.int32), nneigh_per)
    offsets = jnp.tile(jnp.arange(1, nneigh_per + 1, dtype=jnp.int32), natom)
    neighlist = (centerlist + offsets) % natom
    local_species = jnp.zeros_like(centerlist)
    neigh_species = jnp.zeros_like(centerlist)
    center_neighlist = neighlist

    args = (centerlist, neighlist, local_species, neigh_species, center_neighlist, natom)

    energy_p, output_p = mpnn_forward(params, cart, *args, use_pallas=True)
    energy_r, output_r = mpnn_forward(params, cart, *args, use_pallas=False)

    # TODO(synk): torch.autograd force requires differentiating through pallas_call
    # (no custom VJP defined); force is taken via jax.grad of the identical pure-JAX path.
    force = jax.grad(lambda c: mpnn_forward(params, c, *args, use_pallas=False)[0])(cart)
    neg_force = (-force).reshape(-1)

    jax.block_until_ready((energy_p, output_p, neg_force))

    np.testing.assert_allclose(np.asarray(energy_p), np.asarray(energy_r),
                               rtol=5e-3, atol=1e-3)
    np.testing.assert_allclose(np.asarray(output_p), np.asarray(output_r),
                               rtol=5e-3, atol=1e-3)
    print("KERNEL_OK")
</pallas_src>

<mosaic_0001>
module attributes {stable_mosaic.version = 11 : i64} {
  func.func @kernel(%arg0: i32, %arg1: memref<1x1xf32, #tpu.memory_space<vmem>>, %arg2: memref<1x8xf32, #tpu.memory_space<vmem>>, %arg3: memref<1x8xf32, #tpu.memory_space<vmem>>, %arg4: memref<1x8xf32, #tpu.memory_space<vmem>>, %arg5: memref<1x8xf32, #tpu.memory_space<vmem>>, %arg6: memref<8x8xf32, #tpu.memory_space<vmem>>, %arg7: memref<1x8xf32, #tpu.memory_space<vmem>>, %arg8: memref<1x8xf32, #tpu.memory_space<vmem>>, %arg9: memref<1x8xf32, #tpu.memory_space<vmem>>, %arg10: memref<8x24xf32, #tpu.memory_space<vmem>>, %arg11: memref<1x24xf32, #tpu.memory_space<vmem>>, %arg12: memref<1x24xf32, #tpu.memory_space<vmem>>) attributes {dimension_semantics = [#tpu.dimension_semantics<parallel>], iteration_bounds = array<i64: 1>, scalar_prefetch = 0 : i64, scratch_operands = 0 : i64, tpu.core_type = #tpu.core_type<tc>, window_params = [{transform_indices = @transform_0, window_bounds = array<i64: 1, 1>}, {pipeline_mode = #tpu.pipeline_mode<synchronous>, transform_indices = @transform_1, window_bounds = array<i64: 1, 8>}, {pipeline_mode = #tpu.pipeline_mode<synchronous>, transform_indices = @transform_2, window_bounds = array<i64: 1, 8>}, {pipeline_mode = #tpu.pipeline_mode<synchronous>, transform_indices = @transform_3, window_bounds = array<i64: 1, 8>}, {pipeline_mode = #tpu.pipeline_mode<synchronous>, transform_indices = @transform_4, window_bounds = array<i64: 1, 8>}, {pipeline_mode = #tpu.pipeline_mode<synchronous>, transform_indices = @transform_5, window_bounds = array<i64: 8, 8>}, {pipeline_mode = #tpu.pipeline_mode<synchronous>, transform_indices = @transform_6, window_bounds = array<i64: 1, 8>}, {pipeline_mode = #tpu.pipeline_mode<synchronous>, transform_indices = @transform_7, window_bounds = array<i64: 1, 8>}, {pipeline_mode = #tpu.pipeline_mode<synchronous>, transform_indices = @transform_8, window_bounds = array<i64: 1, 8>}, {pipeline_mode = #tpu.pipeline_mode<synchronous>, transform_indices = @transform_9, window_bounds = array<i64: 8, 24>}, {pipeline_mode = #tpu.pipeline_mode<synchronous>, transform_indices = @transform_10, window_bounds = array<i64: 1, 24>}, {transform_indices = @transform_11, window_bounds = array<i64: 1, 24>}]} {
    %c0 = arith.constant 0 : index
    %c0_0 = arith.constant 0 : index
    %0 = vector.load %arg1[%c0, %c0_0] : memref<1x1xf32, #tpu.memory_space<vmem>>, vector<1x1xf32>
    %c0_1 = arith.constant 0 : index
    %c0_2 = arith.constant 0 : index
    %1 = vector.load %arg2[%c0_1, %c0_2] : memref<1x8xf32, #tpu.memory_space<vmem>>, vector<1x8xf32>
    %c0_3 = arith.constant 0 : index
    %c0_4 = arith.constant 0 : index
    %2 = vector.load %arg3[%c0_3, %c0_4] : memref<1x8xf32, #tpu.memory_space<vmem>>, vector<1x8xf32>
    %c0_5 = arith.constant 0 : index
    %c0_6 = arith.constant 0 : index
    %3 = vector.load %arg4[%c0_5, %c0_6] : memref<1x8xf32, #tpu.memory_space<vmem>>, vector<1x8xf32>
    %c0_7 = arith.constant 0 : index
    %c0_8 = arith.constant 0 : index
    %4 = vector.load %arg5[%c0_7, %c0_8] : memref<1x8xf32, #tpu.memory_space<vmem>>, vector<1x8xf32>
    %cst = arith.constant dense<0.000000e+00> : vector<1x8xf32>
    %5 = tpu.matmul %0, %1, %cst {dimension_numbers = #tpu.dot_dimension_numbers<[1], [0], [0], [1], [0, 0, 1, 1], [], []>} : vector<1x1xf32>, vector<1x8xf32>, vector<1x8xf32> -> vector<1x8xf32>
    %6 = arith.addf %5, %2 : vector<1x8xf32>
    %cst_9 = arith.constant dense<0.000000e+00> : vector<1xf32>
    %7 = vector.multi_reduction <add>, %6, %cst_9 [1] : vector<1x8xf32> to vector<1xf32>
    %8 = vector.shape_cast %7 : vector<1xf32> to vector<1x1xf32>
    %cst_10 = arith.constant 8.000000e+00 : f32
    %9 = vector.broadcast %cst_10 : f32 to vector<1x1xf32>
    %10 = arith.divf %8, %9 : vector<1x1xf32>
    %11 = vector.broadcast %10 : vector<1x1xf32> to vector<1x8xf32>
    %12 = arith.subf %6, %11 : vector<1x8xf32>
    %13 = arith.mulf %12, %12 : vector<1x8xf32>
    %cst_11 = arith.constant dense<0.000000e+00> : vector<1xf32>
    %14 = vector.multi_reduction <add>, %13, %cst_11 [1] : vector<1x8xf32> to vector<1xf32>
    %15 = vector.shape_cast %14 : vector<1xf32> to vector<1x1xf32>
    %cst_12 = arith.constant 8.000000e+00 : f32
    %16 = vector.broadcast %cst_12 : f32 to vector<1x1xf32>
    %17 = arith.divf %15, %16 : vector<1x1xf32>
    %18 = vector.broadcast %10 : vector<1x1xf32> to vector<1x8xf32>
    %19 = arith.subf %6, %18 : vector<1x8xf32>
    %cst_13 = arith.constant 9.99999974E-6 : f32
    %20 = vector.broadcast %cst_13 : f32 to vector<1x1xf32>
    %21 = arith.addf %17, %20 : vector<1x1xf32>
    %22 = math.rsqrt %21 : vector<1x1xf32>
    %23 = vector.broadcast %22 : vector<1x1xf32> to vector<1x8xf32>
    %24 = arith.mulf %19, %23 : vector<1x8xf32>
    %25 = arith.mulf %24, %3 : vector<1x8xf32>
    %26 = arith.addf %25, %4 : vector<1x8xf32>
    %27 = arith.negf %26 : vector<1x8xf32>
    %28 = math.exp %27 : vector<1x8xf32>
    %cst_14 = arith.constant 1.000000e+00 : f32
    %29 = vector.broadcast %cst_14 : f32 to vector<1x8xf32>
    %30 = arith.addf %29, %28 : vector<1x8xf32>
    %31 = arith.divf %29, %30 : vector<1x8xf32>
    %32 = arith.mulf %26, %31 : vector<1x8xf32>
    %c0_15 = arith.constant 0 : index
    %c0_16 = arith.constant 0 : index
    %33 = vector.load %arg6[%c0_15, %c0_16] : memref<8x8xf32, #tpu.memory_space<vmem>>, vector<8x8xf32>
    %c0_17 = arith.constant 0 : index
    %c0_18 = arith.constant 0 : index
    %34 = vector.load %arg7[%c0_17, %c0_18] : memref<1x8xf32, #tpu.memory_space<vmem>>, vector<1x8xf32>
    %c0_19 = arith.constant 0 : index
    %c0_20 = arith.constant 0 : index
    %35 = vector.load %arg8[%c0_19, %c0_20] : memref<1x8xf32, #tpu.memory_space<vmem>>, vector<1x8xf32>
    %c0_21 = arith.constant 0 : index
    %c0_22 = arith.constant 0 : index
    %36 = vector.load %arg9[%c0_21, %c0_22] : memref<1x8xf32, #tpu.memory_space<vmem>>, vector<1x8xf32>
    %cst_23 = arith.constant dense<0.000000e+00> : vector<1x8xf32>
    %37 = tpu.matmul %32, %33, %cst_23 {dimension_numbers = #tpu.dot_dimension_numbers<[1], [0], [0], [1], [0, 0, 1, 1], [], []>} : vector<1x8xf32>, vector<8x8xf32>, vector<1x8xf32> -> vector<1x8xf32>
    %38 = arith.addf %37, %34 : vector<1x8xf32>
    %cst_24 = arith.constant dense<0.000000e+00> : vector<1xf32>
    %39 = vector.multi_reduction <add>, %38, %cst_24 [1] : vector<1x8xf32> to vector<1xf32>
    %40 = vector.shape_cast %39 : vector<1xf32> to vector<1x1xf32>
    %cst_25 = arith.constant 8.000000e+00 : f32
    %41 = vector.broadcast %cst_25 : f32 to vector<1x1xf32>
    %42 = arith.divf %40, %41 : vector<1x1xf32>
    %43 = vector.broadcast %42 : vector<1x1xf32> to vector<1x8xf32>
    %44 = arith.subf %38, %43 : vector<1x8xf32>
    %45 = arith.mulf %44, %44 : vector<1x8xf32>
    %cst_26 = arith.constant dense<0.000000e+00> : vector<1xf32>
    %46 = vector.multi_reduction <add>, %45, %cst_26 [1] : vector<1x8xf32> to vector<1xf32>
    %47 = vector.shape_cast %46 : vector<1xf32> to vector<1x1xf32>
    %cst_27 = arith.constant 8.000000e+00 : f32
    %48 = vector.broadcast %cst_27 : f32 to vector<1x1xf32>
    %49 = arith.divf %47, %48 : vector<1x1xf32>
    %50 = vector.broadcast %42 : vector<1x1xf32> to vector<1x8xf32>
    %51 = arith.subf %38, %50 : vector<1x8xf32>
    %cst_28 = arith.constant 9.99999974E-6 : f32
    %52 = vector.broadcast %cst_28 : f32 to vector<1x1xf32>
    %53 = arith.addf %49, %52 : vector<1x1xf32>
    %54 = math.rsqrt %53 : vector<1x1xf32>
    %55 = vector.broadcast %54 : vector<1x1xf32> to vector<1x8xf32>
    %56 = arith.mulf %51, %55 : vector<1x8xf32>
    %57 = arith.mulf %56, %35 : vector<1x8xf32>
    %58 = arith.addf %57, %36 : vector<1x8xf32>
    %59 = arith.negf %58 : vector<1x8xf32>
    %60 = math.exp %59 : vector<1x8xf32>
    %cst_29 = arith.constant 1.000000e+00 : f32
    %61 = vector.broadcast %cst_29 : f32 to vector<1x8xf32>
    %62 = arith.addf %61, %60 : vector<1x8xf32>
    %63 = arith.divf %61, %62 : vector<1x8xf32>
    %64 = arith.mulf %58, %63 : vector<1x8xf32>
    %c0_30 = arith.constant 0 : index
    %c0_31 = arith.constant 0 : index
    %65 = vector.load %arg10[%c0_30, %c0_31] : memref<8x24xf32, #tpu.memory_space<vmem>>, vector<8x24xf32>
    %c0_32 = arith.constant 0 : index
    %c0_33 = arith.constant 0 : index
    %66 = vector.load %arg11[%c0_32, %c0_33] : memref<1x24xf32, #tpu.memory_space<vmem>>, vector<1x24xf32>
    %cst_34 = arith.constant dense<0.000000e+00> : vector<1x24xf32>
    %67 = tpu.matmul %64, %65, %cst_34 {dimension_numbers = #tpu.dot_dimension_numbers<[1], [0], [0], [1], [0, 0, 1, 1], [], []>} : vector<1x8xf32>, vector<8x24xf32>, vector<1x24xf32> -> vector<1x24xf32>
    %68 = arith.addf %67, %66 : vector<1x24xf32>
    %c0_35 = arith.constant 0 : index
    %c0_36 = arith.constant 0 : index
    %69 = vector.load %arg12[%c0_35, %c0_36] : memref<1x24xf32, #tpu.memory_space<vmem>>, vector<1x24xf32>
    tpu.vector_store %arg12[%c0_35, %c0_36], %68 {strides = array<i32>} : memref<1x24xf32, #tpu.memory_space<vmem>>, vector<1x24xf32>,
    return
  }
  func.func @transform_0(%arg0: i32) -> (i32, i32) {
    %c0_i32 = arith.constant 0 : i32
    %c0_i32_0 = arith.constant 0 : i32
    return %arg0, %c0_i32 : i32, i32
  }
  func.func @transform_1(%arg0: i32) -> (i32, i32) {
    %c0_i32 = arith.constant 0 : i32
    %c0_i32_0 = arith.constant 0 : i32
    %c0_i32_1 = arith.constant 0 : i32
    return %c0_i32, %c0_i32_0 : i32, i32
  }
  func.func @transform_2(%arg0: i32) -> (i32, i32) {
    %c0_i32 = arith.constant 0 : i32
    %c0_i32_0 = arith.constant 0 : i32
    %c0_i32_1 = arith.constant 0 : i32
    return %c0_i32, %c0_i32_0 : i32, i32
  }
  func.func @transform_3(%arg0: i32) -> (i32, i32) {
    %c0_i32 = arith.constant 0 : i32
    %c0_i32_0 = arith.constant 0 : i32
    %c0_i32_1 = arith.constant 0 : i32
    return %c0_i32, %c0_i32_0 : i32, i32
  }
  func.func @transform_4(%arg0: i32) -> (i32, i32) {
    %c0_i32 = arith.constant 0 : i32
    %c0_i32_0 = arith.constant 0 : i32
    %c0_i32_1 = arith.constant 0 : i32
    return %c0_i32, %c0_i32_0 : i32, i32
  }
  func.func @transform_5(%arg0: i32) -> (i32, i32) {
    %c0_i32 = arith.constant 0 : i32
    %c0_i32_0 = arith.constant 0 : i32
    %c0_i32_1 = arith.constant 0 : i32
    return %c0_i32, %c0_i32_0 : i32, i32
  }
  func.func @transform_6(%arg0: i32) -> (i32, i32) {
    %c0_i32 = arith.constant 0 : i32
    %c0_i32_0 = arith.constant 0 : i32
    %c0_i32_1 = arith.constant 0 : i32
    return %c0_i32, %c0_i32_0 : i32, i32
  }
  func.func @transform_7(%arg0: i32) -> (i32, i32) {
    %c0_i32 = arith.constant 0 : i32
    %c0_i32_0 = arith.constant 0 : i32
    %c0_i32_1 = arith.constant 0 : i32
    return %c0_i32, %c0_i32_0 : i32, i32
  }
  func.func @transform_8(%arg0: i32) -> (i32, i32) {
    %c0_i32 = arith.constant 0 : i32
    %c0_i32_0 = arith.constant 0 : i32
    %c0_i32_1 = arith.constant 0 : i32
    return %c0_i32, %c0_i32_0 : i32, i32
  }
  func.func @transform_9(%arg0: i32) -> (i32, i32) {
    %c0_i32 = arith.constant 0 : i32
    %c0_i32_0 = arith.constant 0 : i32
    %c0_i32_1 = arith.constant 0 : i32
    return %c0_i32, %c0_i32_0 : i32, i32
  }
  func.func @transform_10(%arg0: i32) -> (i32, i32) {
    %c0_i32 = arith.constant 0 : i32
    %c0_i32_0 = arith.constant 0 : i32
    %c0_i32_1 = arith.constant 0 : i32
    return %c0_i32, %c0_i32_0 : i32, i32
  }
  func.func @transform_11(%arg0: i32) -> (i32, i32) {
    %c0_i32 = arith.constant 0 : i32
    %c0_i32_0 = arith.constant 0 : i32
    return %arg0, %c0_i32 : i32, i32
  }
}

</mosaic_0001>

<bundles_post_ra>
// kernel: tpu_custom_call.1
= control target key start
LH: loop header
LB: loop body
LE: loop exit
PB: predicated region body
PF: predicated region fallthrough
CT: control target
= control target key end

     0   :  { %s615_s0 = inlined_call_operand.<no memory space> [shape: f32[1,1], index: 0, kind: input, shape index: {}]   ;;  %s616_s1 = inlined_call_operand.vmem [shape: f32[1,8], index: 1, kind: input, shape index: {}]   ;;  %s617_s2 = inlined_call_operand.vmem [shape: f32[1,8], index: 2, kind: input, shape index: {}]   ;;  %s618_s3 = inlined_call_operand.hbm [shape: f32[1,8], index: 3, kind: input, shape index: {}]   ;;  %s619_s4 = inlined_call_operand.hbm [shape: f32[1,8], index: 4, kind: input, shape index: {}]   ;;  %s620_s5 = inlined_call_operand.vmem [shape: f32[8,8], index: 5, kind: input, shape index: {}]   ;;  %s621_s6 = inlined_call_operand.vmem [shape: f32[1,8], index: 6, kind: input, shape index: {}]   ;;  %s622_s7 = inlined_call_operand.vmem [shape: f32[1,8], index: 7, kind: input, shape index: {}]   ;;  %s623_s8 = inlined_call_operand.vmem [shape: f32[1,8], index: 8, kind: input, shape index: {}]   ;;  %s624_s9 = inlined_call_operand.vmem [shape: f32[8,24], index: 9, kind: input, shape index: {}]   ;;  %s625_s10 = inlined_call_operand.vmem [shape: f32[1,24], index: 10, kind: input, shape index: {}]   ;;  %s626_s11 = inlined_call_operand.hbm [shape: f32[1,24], index: 11, kind: output, shape index: {}]  }
   0x1   :  { %v16_v0 = vstv %s615_s0 }
   0x2   :  { %17 = vst [vmem:[#allocation2] sm:$0x1] %v16_v0 }
   0x3   :  { %18 = vsyncpa [#allocation4], 0 }
   0x4   :  { %19 = vsyncpa [#allocation7], 0 }
   0x5   :  { %20 = vsyncpa [#allocation5], 0  ;;  %s481_s19 = smov [#allocation3]   ;;  %s482_s21 = smov [#allocation6]  }
   0x6   :  { %s33_s20 = sshll.u32 %s481_s19, 4  ;;  %s43_s22 = sshll.u32 %s482_s21, 4  ;;  %s34_s20 = int_to_ptr.vmem [resolvable:$true] %s33_s20  ;;  %s44_s22 = int_to_ptr.vmem [resolvable:$true] %s43_s22 }
   0x7   :  { %s409_s25 = scalar_lea.hbm %s618_s3, 16 }
   0x8   :  { %p410_p0 = scmp.ne.s32.totalorder %s618_s3, %s409_s25  ;;  %p413_p1 = scmp.lt.u32.totalorder %s409_s25, %s618_s3 }
   0xa   :  { %p415_p2 = pnand %p413_p1, %p410_p0 }
   0xc   :  { %418 = shalt.err (!%p415_p2)
}
   0xd   :  { %s419_s29 = scalar_lea.vmem %s34_s20, 16  ;;  %s423_s30 = scalar_lea.vmem %s34_s20, 32 }
   0xe   :  { %p420_p3 = scmp.ne.s32.totalorder %s34_s20, %s419_s29  ;;  %p424_p4 = scmp.lt.s32.totalorder %s34_s20, %s34_s20 }
   0xf   :  { %p425_p5 = scmp.lt.s32.totalorder %s423_s30, %s419_s29 }
  0x11   :  { %p426_p6 = por %p425_p5, %p424_p4 }
  0x13   :  { %p427_p7 = pnand %p426_p6, %p420_p3 }
  0x15   :  { %430 = shalt.err (!%p427_p7)
}
  0x16   :  { %36 = dma.hbm_to_vmem [thread:$0]  %s618_s3, 16, %s34_s20, [#allocation4]  }
  0x17   :  { %s431_s16 = scalar_lea.hbm %s619_s4, 16 }
  0x18   :  { %p432_p8 = scmp.ne.s32.totalorder %s619_s4, %s431_s16  ;;  %p435_p9 = scmp.lt.u32.totalorder %s431_s16, %s619_s4 }
  0x1a   :  { %p437_p10 = pnand %p435_p9, %p432_p8 }
  0x1c   :  { %440 = shalt.err (!%p437_p10)
}
  0x1d   :  { %s441_s23 = scalar_lea.vmem %s44_s22, 16  ;;  %s445_s24 = scalar_lea.vmem %s44_s22, 32 }
  0x1e   :  { %p442_p11 = scmp.ne.s32.totalorder %s44_s22, %s441_s23  ;;  %p446_p12 = scmp.lt.s32.totalorder %s44_s22, %s44_s22 }
  0x1f   :  { %p447_p13 = scmp.lt.s32.totalorder %s445_s24, %s441_s23 }
  0x21   :  { %p448_p0 = por %p447_p13, %p446_p12 }
  0x23   :  { %p449_p1 = pnand %p448_p0, %p442_p11 }
  0x25   :  { %452 = shalt.err (!%p449_p1)
}
  0x26   :  { %46 = dma.hbm_to_vmem [thread:$0]  %s619_s4, 16, %s44_s22, [#allocation7]  }
  0x27   :  { %475 = dma.done.wait [#allocation4], 16  }
  0x28   :  { %476 = vsyncadd [#allocation4], 4294967280 }
  0x29   :  { %477 = dma.done.wait [#allocation7], 16  }
  0x2a   :  { %478 = vsyncadd [#allocation7], 4294967280  ;;  %v483_v1 = vmov 0.0   ;;  %vm484_vm0 = vmmov 0   ;;  %vm74_vm1 = vcmask 1040384   ;;  %vm70_vm2 = vcmask 7168  }
  0x2b   :  { %377 = vmatprep.subr.mxu0 %v483_v1  ;;  %379 = vmatprep.mubr.msk.f32.mxu0 %vm484_vm0, %v483_v1  ;;  %v66_v2 = vld [vmem:[%s616_s1] sm:$0x1]  ;;  %vm148_vm3 = vcmask 57344   ;;  %v68_v19 = vld [vmem:[#allocation3] sm:$0x1]  ;;  %vm176_vm4 = vcmask 64512  }
  0x2c   :  { %382 = vmatprep.subr.mxu1 %v483_v1  ;;  %384 = vmatprep.mubr.msk.f32.mxu1 %vm484_vm0, %v483_v1  ;;  %v65_v3 = vld [vmem:[#allocation2] sm:$0x1]  ;;  %v69_v21 = vld [vmem:[#allocation6] sm:$0x1]  ;;  %vm347_vm5 = vcmask 188416  }
  0x2d   :  { %378 = vmatpush3.msk.msra.mxu0 %vm74_vm1, %v66_v2  ;;  %v67_v4 = vld [vmem:[%s617_s2] sm:$0x1] }
  0x2e   :  { %380 = vmatmul.mubr.msk.f32.vlgmr.msra.gmra.mrb[0].mxu0 %vm70_vm2, %v65_v3  ;;  %387 = vmatprep.subr.mxu0 %v483_v1  ;;  %v172_v14 = vld [vmem:[%s620_s5] sm:$0xff] }
  0x2f   :  { %389 = vmatprep.mubr.msk.f32.mxu0 %vm484_vm0, %v483_v1  ;;  %383 = vmatpush3.msra.mxu1 %v172_v14  ;;  %v173_v29 = vld [vmem:[%s621_s6] sm:$0x1] }
  0x30   :  { %v272_v39 = vld [vmem:[%s624_s9] sm:$0xff] }
  0x31   :  { %388 = vmatpush3.msra.mxu0 %v272_v39  ;;  %v174_v44 = vld [vmem:[%s622_s7] sm:$0x1]  ;;  %s485_s7 = smov [#allocation8]  }
  0x32   :  { %v175_v46 = vld [vmem:[%s623_s8] sm:$0x1]  ;;  %s355_s14 = sshll.u32 %s485_s7, 4  ;;  %s356_s14 = int_to_ptr.vmem [resolvable:$true] %s355_s14 }
  0x33   :  { %v273_v54 = vld [vmem:[%s625_s10] sm:$0x1]  ;;  %s453_s8 = scalar_lea.vmem %s356_s14, 16  ;;  %s457_s15 = scalar_lea.vmem %s356_s14, 32 }
  0x34   :  { %p454_p2 = scmp.ne.s32.totalorder %s356_s14, %s453_s8  ;;  %p458_p3 = scmp.lt.s32.totalorder %s356_s14, %s356_s14 }
  0x35   :  { %p459_p4 = scmp.lt.s32.totalorder %s457_s15, %s453_s8 }
  0x37   :  { %p460_p5 = por %p459_p4, %p458_p3 }
  0x39   :  { %p461_p6 = pnand %p460_p5, %p454_p2 }
 0x101   :  { %v144_v5 = vpop.f32.mrb[0].mxu0 }
 0x102   :  { %v145_v6 = vadd.f32 %v144_v5, %v67_v4  ;;  %v381_v7 = vpop.f32.mrb[1].mxu0 }
 0x104   :  { %v149_v8 = vsel %vm148_vm3, %v145_v6, 0.0 }
 0x105   :  { %150 = vadd.xlane.f32.xlu0 %v149_v8 }
 0x192   :  { %v151_v9 = vpop.xlane.xlu0 %150 }
 0x193   :  { %v153_v10 = vmul.f32 0.125, %v151_v9 }
 0x195   :  { %v154_v11 = vsub.f32 %v145_v6, %v153_v10 }
 0x197   :  { %v155_v12 = vmul.f32 %v154_v11, %v154_v11 }
 0x199   :  { %v156_v13 = vsel %vm148_vm3, %v155_v12, 0.0 }
 0x19a   :  { %157 = vadd.xlane.f32.xlu0 %v156_v13 }
 0x227   :  { %v158_v15 = vpop.xlane.xlu0 %157 }
 0x228   :  { %v159_v16 = vmul.f32 0.125, %v158_v15 }
 0x22a   :  { %v160_v17 = vadd.f32 1e-05, %v159_v16 }
 0x22c   :  { %397 = vrsqrt.f32 %v160_v17 }
 0x236   :  { %v398_v18 = vpop.eup %397 }
 0x237   :  { %v162_v20 = vmul.f32 %v398_v18, %v154_v11 }
 0x239   :  { %v163_v22 = vmul.f32 %v162_v20, %v68_v19 }
 0x23b   :  { %v164_v23 = vadd.f32 %v163_v22, %v69_v21 }
 0x23d   :  { %v367_v24 = vmul.f32 -1.442695, %v164_v23 }
 0x23f   :  { %399 = vpow2.f32 %v367_v24 }
 0x249   :  { %v400_v25 = vpop.eup %399 }
 0x24a   :  { %v168_v26 = vadd.f32 1.0, %v400_v25 }
 0x24c   :  { %401 = vrcp.f32 %v168_v26 }
 0x256   :  { %v402_v27 = vpop.eup %401 }
 0x257   :  { %v171_v28 = vmul.f32 %v402_v27, %v164_v23 }
 0x259   :  { %385 = vmatmul.mubr.msk.f32.vlgmr.msra.gmra.mrb[0].mxu1 %vm176_vm4, %v171_v28 }
 0x32c   :  { %v246_v30 = vpop.f32.mrb[0].mxu1 }
 0x32d   :  { %v247_v31 = vadd.f32 %v246_v30, %v173_v29  ;;  %v386_v32 = vpop.f32.mrb[1].mxu1 }
 0x32f   :  { %v250_v33 = vsel %vm148_vm3, %v247_v31, 0.0 }
 0x330   :  { %251 = vadd.xlane.f32.xlu1 %v250_v33 }
 0x3bd   :  { %v252_v34 = vpop.xlane.xlu1 %251 }
 0x3be   :  { %v253_v35 = vmul.f32 0.125, %v252_v34 }
 0x3c0   :  { %v254_v36 = vsub.f32 %v247_v31, %v253_v35 }
 0x3c2   :  { %v255_v37 = vmul.f32 %v254_v36, %v254_v36 }
 0x3c4   :  { %v256_v38 = vsel %vm148_vm3, %v255_v37, 0.0 }
 0x3c5   :  { %257 = vadd.xlane.f32.xlu1 %v256_v38 }
 0x452   :  { %v258_v40 = vpop.xlane.xlu1 %257 }
 0x453   :  { %v259_v41 = vmul.f32 0.125, %v258_v40 }
 0x455   :  { %v260_v42 = vadd.f32 1e-05, %v259_v41 }
 0x457   :  { %403 = vrsqrt.f32 %v260_v42 }
 0x461   :  { %v404_v43 = vpop.eup %403 }
 0x462   :  { %v262_v45 = vmul.f32 %v404_v43, %v254_v36 }
 0x464   :  { %v263_v47 = vmul.f32 %v262_v45, %v174_v44 }
 0x466   :  { %v264_v48 = vadd.f32 %v263_v47, %v175_v46 }
 0x468   :  { %v369_v49 = vmul.f32 -1.442695, %v264_v48 }
 0x46a   :  { %405 = vpow2.f32 %v369_v49 }
 0x474   :  { %v406_v50 = vpop.eup %405 }
 0x475   :  { %v268_v51 = vadd.f32 1.0, %v406_v50 }
 0x477   :  { %407 = vrcp.f32 %v268_v51 }
 0x481   :  { %v408_v52 = vpop.eup %407 }
 0x482   :  { %v271_v53 = vmul.f32 %v408_v52, %v264_v48 }
 0x484   :  { %390 = vmatmul.mubr.msk.f32.vlgmr.msra.gmra.mrb[2].mxu0 %vm176_vm4, %v271_v53 }
 0x557   :  { %v343_v55 = vpop.f32.mrb[2].mxu0 }
 0x558   :  { %v344_v56 = vadd.f32 %v343_v55, %v273_v54  ;;  %v391_v57 = vpop.f32.mrb[3].mxu0 }
 0x55a   :  { %348 = vst.msk [vmem:[#allocation8] sm:$0x1] %vm347_vm5, %v344_v56 }
 0x55b   :  { %464 = shalt.err (!%p461_p6)
}
 0x55c   :  { %s465_s10 = scalar_lea.hbm %s626_s11, 16 }
 0x55d   :  { %p466_p7 = scmp.ne.s32.totalorder %s626_s11, %s465_s10  ;;  %p469_p8 = scmp.lt.u32.totalorder %s465_s10, %s626_s11 }
 0x55f   :  { %p471_p9 = pnand %p469_p8, %p466_p7 }
 0x561   :  { %474 = shalt.err (!%p471_p9)
}
 0x562   :  { %358 = dma.vmem_to_hbm [thread:$0]  %s356_s14, 16, %s626_s11, [#allocation5]  }
 0x563   :  { %479 = dma.done.wait [#allocation5], 16  }
 0x564   :  { %480 = vsyncadd [#allocation5], 4294967280 }
 0x565   :  { %362 = vsyncpa [#allocation4], 1 }
 0x566   :  { %363 = vsyncpa [#allocation7], 1 }
 0x567   :  { %364 = vsyncpa [#allocation5], 1 }

</bundles_post_ra>
